<compile_context>
chip_gen: v7x
topology: tpu7x:2x2x1
jax: 0.10.0
libtpu: 0.0.40
codegen_flags: <defaults>
</compile_context>

<pallas_src>
import math

import jax
import jax.numpy as jnp
from jax.experimental import pallas as pl
from jax.experimental.pallas import tpu as pltpu


# ---------------------------------------------------------------------------
# helpers
# ---------------------------------------------------------------------------

def _pick_t_block(t, rows, itemsize=4, target_bytes=2 << 20):
    """Largest lane-dense (multiple-of-128) time block dividing T whose
    (rows x Tb x itemsize) footprint stays within ~target_bytes."""
    divisors = [c for c in (8192, 4096, 2048, 1024, 512, 256, 128) if t % c == 0]
    if not divisors:
        # TODO(synk): pad ragged T to a multiple of 128; full-axis block for small T.
        return t
    for c in divisors:                      # descending: biggest block within budget
        if rows * c * itemsize <= target_bytes:
            return c
    return divisors[-1]                     # huge row count: smallest lane-dense block


def _vmem_limit_bytes(*blocks):
    """2x (double buffering) of the per-step block bytes plus headroom,
    capped generation-aware (0.75x physical VMEM when queryable)."""
    per_step = sum(math.prod(s) * jnp.dtype(d).itemsize for s, d in blocks)
    want = 2 * per_step + (4 << 20)
    cap = 48 << 20                          # safe default for 64 MiB (v7x) parts
    try:
        cap = int(pltpu.get_tpu_info().vmem_capacity_bytes * 3 // 4)
    except Exception:
        pass
    return int(min(max(want, 16 << 20), cap))


def _hard_onehot_dt(z):
    """(D, Tb) scores -> (D, Tb) float32 one-hot of the per-column argmax.

    hard=True forward value: argmax((x+g)/tau) == argmax(x+g), so no softmax/exp.
    First-hit tie-break matches torch/jnp argmax semantics.
    """
    d, tb = z.shape
    zmax = jnp.max(z, axis=0, keepdims=True)                       # (1, Tb)
    d_iota = jax.lax.broadcasted_iota(jnp.int32, (d, tb), 0)
    cand = jnp.where(z >= zmax, d_iota, d)
    amin = jnp.min(cand, axis=0, keepdims=True)                    # (1, Tb) argmax_d
    return (d_iota == amin).astype(jnp.float32)                    # (D, Tb)


# ---------------------------------------------------------------------------
# kernels
# ---------------------------------------------------------------------------

def _gumbel_sample_kernel(logits_ref, noise_ref, out_ref):
    """logits/noise [1, D, Tb] -> hard one-hot [1, Tb, D] (final [B,T,D] layout)."""
    z = logits_ref[0].astype(jnp.float32) + noise_ref[0]           # (D, Tb)
    onehot_dt = _hard_onehot_dt(z)
    # In-kernel transpose uses the otherwise-idle XLU slot and avoids a second
    # full read+write of the tensor that an XLA permute would cost.
    out_ref[0] = jnp.transpose(onehot_dt).astype(out_ref.dtype)    # (Tb, D)


def _sample_embed_kernel(logits_ref, noise_ref, embeds_t_ref, out_ref):
    """Fused gumbel hard-sample + embedding lookup.  out: [1, E, Tb]."""
    z = logits_ref[0].astype(jnp.float32) + noise_ref[0]           # (D, Tb)
    onehot_dt = _hard_onehot_dt(z)
    out_ref[0] = jnp.dot(embeds_t_ref[...], onehot_dt,             # (E, Tb)
                         preferred_element_type=jnp.float32).astype(out_ref.dtype)


def _embed_kernel(idx_ref, embeds_t_ref, out_ref):
    """Embedding lookup for integer codes, written directly in [B, E, T] layout.

    idx_ref [1, 1, Tb] int32, embeds_t_ref [E, D] f32, out_ref [1, E, Tb] f32.
    """
    idx = idx_ref[0]                                               # (1, Tb)
    e, d = embeds_t_ref.shape
    tb = idx.shape[-1]
    d_iota = jax.lax.broadcasted_iota(jnp.int32, (d, tb), 0)
    onehot_dt = (d_iota == idx).astype(jnp.float32)                # (D, Tb)
    # TODO(synk): for large n_class a sublane gather of embeds rows would beat
    # this K=D one-hot matmul; matmul kept here for guaranteed lowering.
    out_ref[0] = jnp.dot(embeds_t_ref[...], onehot_dt,
                         preferred_element_type=jnp.float32)


def _kl_kernel(lens_ref, logits_ref, out_ref, num_acc, den_acc):
    """Per-batch masked mean of sum_d alpha*log(alpha), alpha = softmax(logits, dim=D).

    Grid (B, T // Tb); batch axis is "parallel" (independent output rows), the
    time axis reduces into VMEM accumulators.  out_ref [1, 1, 1] per batch row.
    """
    b = pl.program_id(0)
    ti = pl.program_id(1)
    nt = pl.num_programs(1)

    @pl.when(ti == 0)
    def _():
        num_acc[...] = jnp.zeros_like(num_acc)
        den_acc[...] = jnp.zeros_like(den_acc)

    x = logits_ref[0].astype(jnp.float32)                          # (D, Tb)
    _, tb = x.shape
    y = x - jnp.max(x, axis=0, keepdims=True)
    e = jnp.exp(y)
    s = jnp.sum(e, axis=0, keepdims=True)                          # (1, Tb)
    # exact neg-entropy via log-sum-exp: sum_d alpha*log(alpha) = (sum_d e*y)/s - log(s)
    neg_ent = jnp.sum(e * y, axis=0, keepdims=True) / s - jnp.log(s)

    t_iota = ti * tb + jax.lax.broadcasted_iota(jnp.int32, (1, tb), 1)
    m = (t_iota < lens_ref[b]).astype(jnp.float32)                 # (1, Tb)

    num_acc[...] += jnp.sum(neg_ent * m, axis=1, keepdims=True)
    den_acc[...] += jnp.sum(m, axis=1, keepdims=True)

    @pl.when(ti == nt - 1)
    def _():
        # lens[b] == 0 guarded to contribute 0 (torch reference would NaN).
        out_ref[0] = num_acc[...] / jnp.maximum(den_acc[...], 1.0)


# ---------------------------------------------------------------------------
# module wrapper
# ---------------------------------------------------------------------------

class TVConvSADiscBNEncoderPallas:
    """Pallas/TPU port of the discrete-latent head of TVConvSADiscBNEncoder."""

    def __init__(self, n_class, temperature, embed_dim, seed=42):
        self.disc_dim = int(n_class)
        self.temperature = float(temperature)   # hard forward value is tau-invariant
        # PyTorch: self.embeds = nn.Parameter(FloatTensor(1, n_class, embd_dim)); uniform_()
        k = jax.random.PRNGKey(seed)
        self.embeds = jax.random.uniform(k, (self.disc_dim, int(embed_dim)), jnp.float32)
        self.embeds_t = jnp.transpose(self.embeds)   # [E, D]: kernels emit [B, E, T] directly

    # ------------------------------------------------------------------ #
    def forward(self, x, lens=None):
        # TODO(synk): the conv (ConvBNBlk / MaskedBatchNorm1d) + FFTBlock
        # self-attention frontend producing `logits` is not translated (its
        # submodule definitions are not part of this spec); forward_tail()
        # implements the sample + embeds-matmul tail of forward() from logits.
        raise NotImplementedError

    # ------------------------------------------------------------------ #
    def forward_tail(self, logits, key):
        """Tail of forward(): samples = sample(logits); out = matmul(samples, embeds).permute(0,2,1).

        logits [B, D, T] (native dtype) -> (logits, out [B, E, T]); fused in one kernel.
        """
        b, d, t = logits.shape
        e = self.embeds.shape[1]
        it = jnp.dtype(logits.dtype).itemsize
        t_blk = _pick_t_block(t, rows=d + d + e, itemsize=max(it, 4))
        noise = jax.random.gumbel(key, (b, d, t), jnp.float32)

        out = pl.pallas_call(
            _sample_embed_kernel,
            out_shape=jax.ShapeDtypeStruct((b, e, t), jnp.float32),
            grid=(b, t // t_blk),
            in_specs=[pl.BlockSpec((1, d, t_blk), lambda bi, ti: (bi, 0, ti)),
                      pl.BlockSpec((1, d, t_blk), lambda bi, ti: (bi, 0, ti)),
                      pl.BlockSpec((e, d), lambda bi, ti: (0, 0))],
            out_specs=pl.BlockSpec((1, e, t_blk), lambda bi, ti: (bi, 0, ti)),
            compiler_params=pltpu.CompilerParams(
                dimension_semantics=("parallel", "parallel"),
                vmem_limit_bytes=_vmem_limit_bytes(
                    ((1, d, t_blk), logits.dtype),
                    ((1, d, t_blk), jnp.float32),
                    ((e, d), jnp.float32),
                    ((1, e, t_blk), jnp.float32))),
        )(logits, noise, self.embeds_t)
        return logits, out

    # ------------------------------------------------------------------ #
    def sample(self, logits, key):
        """logits [B, D, T] -> hard one-hot samples [B, T, D] in logits.dtype.

        The kernel writes directly into the final [B, T, D] layout (no XLA
        permute of the full tensor); logits are read in their native dtype.
        """
        b, d, t = logits.shape
        it = jnp.dtype(logits.dtype).itemsize
        t_blk = _pick_t_block(t, rows=3 * d, itemsize=max(it, 4))
        noise = jax.random.gumbel(key, (b, d, t), jnp.float32)

        return pl.pallas_call(
            _gumbel_sample_kernel,
            out_shape=jax.ShapeDtypeStruct((b, t, d), logits.dtype),
            grid=(b, t // t_blk),
            in_specs=[pl.BlockSpec((1, d, t_blk), lambda bi, ti: (bi, 0, ti)),
                      pl.BlockSpec((1, d, t_blk), lambda bi, ti: (bi, 0, ti))],
            out_specs=pl.BlockSpec((1, t_blk, d), lambda bi, ti: (bi, ti, 0)),
            compiler_params=pltpu.CompilerParams(
                dimension_semantics=("parallel", "parallel"),
                vmem_limit_bytes=_vmem_limit_bytes(
                    ((1, d, t_blk), logits.dtype),
                    ((1, d, t_blk), jnp.float32),
                    ((1, t_blk, d), logits.dtype))),
        )(logits, noise)

    # ------------------------------------------------------------------ #
    def embed(self, idx):
        """idx [B, T] int32 -> embeddings [B, E, T] float32 (already permuted)."""
        idx = idx.astype(jnp.int32)
        b, t = idx.shape
        d, e = self.embeds.shape
        t_blk = _pick_t_block(t, rows=e + 1, itemsize=4)
        idx3 = idx.reshape(b, 1, t)     # keep the (sublane, lane) block dims full/aligned

        return pl.pallas_call(
            _embed_kernel,
            out_shape=jax.ShapeDtypeStruct((b, e, t), jnp.float32),
            grid=(b, t // t_blk),
            in_specs=[pl.BlockSpec((1, 1, t_blk), lambda bi, ti: (bi, 0, ti)),
                      pl.BlockSpec((e, d), lambda bi, ti: (0, 0))],
            out_specs=pl.BlockSpec((1, e, t_blk), lambda bi, ti: (bi, 0, ti)),
            compiler_params=pltpu.CompilerParams(
                dimension_semantics=("parallel", "parallel"),
                vmem_limit_bytes=_vmem_limit_bytes(((1, 1, t_blk), jnp.int32),
                                                   ((e, d), jnp.float32),
                                                   ((1, e, t_blk), jnp.float32))),
        )(idx3, self.embeds_t)

    # ------------------------------------------------------------------ #
    def kl_divergence(self, logits, lens=None, EPS=1e-12):
        """logits [B, D, T], lens [B] or None -> scalar KL(softmax || Uniform).

        EPS kept for API parity; the kernel uses the exact log-sum-exp form.
        The kernel emits per-batch masked means (batch axis "parallel" so v7x's
        two TensorCores both get work); the final mean + log(n_class) is XLA.
        """
        b, d, t = logits.shape
        it = jnp.dtype(logits.dtype).itemsize
        t_blk = _pick_t_block(t, rows=d, itemsize=max(it, 4))
        if lens is None:
            lens = jnp.full((b,), t, jnp.int32)
        lens = lens.astype(jnp.int32)

        grid_spec = pltpu.PrefetchScalarGridSpec(
            num_scalar_prefetch=1,
            grid=(b, t // t_blk),
            in_specs=[pl.BlockSpec((1, d, t_blk), lambda bi, ti, lens: (bi, 0, ti))],
            out_specs=pl.BlockSpec((1, 1, 1), lambda bi, ti, lens: (bi, 0, 0)),
            scratch_shapes=[pltpu.VMEM((1, 1), jnp.float32),
                            pltpu.VMEM((1, 1), jnp.float32)],
        )
        per_b = pl.pallas_call(
            _kl_kernel,
            out_shape=jax.ShapeDtypeStruct((b, 1, 1), jnp.float32),
            grid_spec=grid_spec,
            compiler_params=pltpu.CompilerParams(
                dimension_semantics=("parallel", "arbitrary"),
                vmem_limit_bytes=_vmem_limit_bytes(((1, d, t_blk), logits.dtype))),
        )(lens, logits)
        return jnp.mean(per_b[:, 0, 0]) + jnp.log(jnp.float32(self.disc_dim))


# ---------------------------------------------------------------------------
if __name__ == "__main__":
    B, D_CLS, T, E = 2, 16, 8, 32          # batch, n_class, seq len, embed dim
    enc = TVConvSADiscBNEncoderPallas(n_class=D_CLS, temperature=0.5, embed_dim=E)

    key = jax.random.PRNGKey(0)
    k_logits, k_idx, k_s1, k_s2 = jax.random.split(key, 4)

    logits = jax.random.normal(k_logits, (B, D_CLS, T), jnp.float32)   # [B, D, T]
    idx = jax.random.randint(k_idx, (B, T), 0, D_CLS, jnp.int32)       # [B, T]
    lens = jnp.array([T, T - 3], jnp.int32)

    samples = enc.sample(logits, k_s1)              # [B, T, D] hard one-hot
    emb = enc.embed(idx)                            # [B, E, T]
    kl = enc.kl_divergence(logits, lens)            # scalar
    _, out = enc.forward_tail(logits, k_s2)         # ([B, D, T], [B, E, T])
    jax.block_until_ready((samples, emb, kl, out))

    # --- shape / semantics checks -----------------------------------------
    assert samples.shape == (B, T, D_CLS)
    assert emb.shape == (B, E, T)
    assert out.shape == (B, E, T)
    assert bool(jnp.allclose(jnp.sum(samples, axis=-1), 1.0))          # valid one-hots
    assert bool(jnp.isfinite(kl))

    # sample() vs pure-JAX gumbel-max reference with the SAME noise draw
    g1 = jax.random.gumbel(k_s1, (B, D_CLS, T), jnp.float32)
    sel1 = jnp.argmax(logits + g1, axis=1)                             # [B, T]
    samples_ref = jax.nn.one_hot(sel1, D_CLS, dtype=samples.dtype)     # [B, T, D]
    assert bool(jnp.allclose(samples, samples_ref))

    # embed() vs pure-JAX gather reference
    emb_ref = jnp.transpose(enc.embeds[idx], (0, 2, 1))
    assert bool(jnp.allclose(emb, emb_ref, atol=1e-5, rtol=1e-5))

    # kl_divergence() vs pure-JAX reference
    alpha = jax.nn.softmax(logits, axis=1)                             # [B, D, T]
    neg_ent = jnp.sum(alpha * jnp.log(alpha + 1e-12), axis=1)          # [B, T]
    mask = (jnp.arange(T)[None, :] < lens[:, None]).astype(jnp.float32)
    kl_ref = (jnp.mean(jnp.sum(neg_ent * mask, axis=1) / jnp.sum(mask, axis=1))
              + jnp.log(float(D_CLS)))
    assert bool(jnp.abs(kl - kl_ref) < 1e-3)

    # forward_tail() vs pure-JAX reference with the SAME noise draw
    g2 = jax.random.gumbel(k_s2, (B, D_CLS, T), jnp.float32)
    sel2 = jnp.argmax(logits + g2, axis=1)                             # [B, T]
    out_ref = jnp.transpose(enc.embeds[sel2], (0, 2, 1))               # [B, E, T]
    assert bool(jnp.allclose(out, out_ref, atol=1e-5, rtol=1e-5))

    print("KERNEL_OK")
</pallas_src>

<mosaic_0001>
module attributes {stable_mosaic.version = 11 : i64} {
  func.func @_gumbel_sample_kernel(%arg0: i32, %arg1: i32, %arg2: memref<1x16x8xf32, #tpu.memory_space<vmem>>, %arg3: memref<1x16x8xf32, #tpu.memory_space<vmem>>, %arg4: memref<1x8x16xf32, #tpu.memory_space<vmem>>) attributes {dimension_semantics = [#tpu.dimension_semantics<parallel>, #tpu.dimension_semantics<parallel>], iteration_bounds = array<i64: 2, 1>, scalar_prefetch = 0 : i64, scratch_operands = 0 : i64, tpu.core_type = #tpu.core_type<tc>, window_params = [{transform_indices = @transform_0, window_bounds = array<i64: 1, 16, 8>}, {transform_indices = @transform_1, window_bounds = array<i64: 1, 16, 8>}, {transform_indices = @transform_2, window_bounds = array<i64: 1, 8, 16>}]} {
    %c0 = arith.constant 0 : index
    %c0_0 = arith.constant 0 : index
    %c0_1 = arith.constant 0 : index
    %0 = vector.load %arg2[%c0, %c0_0, %c0_1] : memref<1x16x8xf32, #tpu.memory_space<vmem>>, vector<1x16x8xf32>
    %1 = vector.shape_cast %0 : vector<1x16x8xf32> to vector<16x8xf32>
    %c0_2 = arith.constant 0 : index
    %c0_3 = arith.constant 0 : index
    %c0_4 = arith.constant 0 : index
    %2 = vector.load %arg3[%c0_2, %c0_3, %c0_4] : memref<1x16x8xf32, #tpu.memory_space<vmem>>, vector<1x16x8xf32>
    %3 = vector.shape_cast %2 : vector<1x16x8xf32> to vector<16x8xf32>
    %4 = arith.addf %1, %3 : vector<16x8xf32>
    %cst = arith.constant dense<0xFF800000> : vector<8xf32>
    %5 = vector.multi_reduction <maximumf>, %4, %cst [0] : vector<16x8xf32> to vector<8xf32>
    %6 = vector.shape_cast %5 : vector<8xf32> to vector<1x8xf32>
    %7 = tpu.iota {dimensions = array<i32: 0>} : vector<16x8xi32>
    %8 = vector.broadcast %6 : vector<1x8xf32> to vector<16x8xf32>
    %9 = arith.cmpf oge, %4, %8 : vector<16x8xf32>
    %c16_i32 = arith.constant 16 : i32
    %10 = vector.broadcast %c16_i32 : i32 to vector<16x8xi32>
    %11 = arith.select %9, %7, %10 : vector<16x8xi1>, vector<16x8xi32>
    %cst_5 = arith.constant dense<2147483647> : vector<8xi32>
    %12 = vector.multi_reduction <minsi>, %11, %cst_5 [0] : vector<16x8xi32> to vector<8xi32>
    %13 = vector.shape_cast %12 : vector<8xi32> to vector<1x8xi32>
    %14 = vector.broadcast %13 : vector<1x8xi32> to vector<16x8xi32>
    %15 = arith.cmpi eq, %7, %14 : vector<16x8xi32>
    %16 = arith.extui %15 : vector<16x8xi1> to vector<16x8xi32>
    %17 = arith.sitofp %16 : vector<16x8xi32> to vector<16x8xf32>
    %18 = tpu.transpose %17, [1, 0] : vector<16x8xf32> -> vector<8x16xf32>
    %c0_6 = arith.constant 0 : index
    %c0_7 = arith.constant 0 : index
    %c0_8 = arith.constant 0 : index
    %19 = vector.load %arg4[%c0_6, %c0_7, %c0_8] : memref<1x8x16xf32, #tpu.memory_space<vmem>>, vector<1x8x16xf32>
    %20 = vector.shape_cast %19 : vector<1x8x16xf32> to vector<8x16xf32>
    %21 = vector.shape_cast %18 : vector<8x16xf32> to vector<1x8x16xf32>
    tpu.vector_store %arg4[%c0_6, %c0_7, %c0_8], %21 {strides = array<i32>} : memref<1x8x16xf32, #tpu.memory_space<vmem>>, vector<1x8x16xf32>,
    return
  }
  func.func @transform_0(%arg0: i32, %arg1: i32) -> (i32, i32, i32) {
    %c0_i32 = arith.constant 0 : i32
    %c0_i32_0 = arith.constant 0 : i32
    return %arg0, %c0_i32, %arg1 : i32, i32, i32
  }
  func.func @transform_1(%arg0: i32, %arg1: i32) -> (i32, i32, i32) {
    %c0_i32 = arith.constant 0 : i32
    %c0_i32_0 = arith.constant 0 : i32
    return %arg0, %c0_i32, %arg1 : i32, i32, i32
  }
  func.func @transform_2(%arg0: i32, %arg1: i32) -> (i32, i32, i32) {
    %c0_i32 = arith.constant 0 : i32
    %c0_i32_0 = arith.constant 0 : i32
    return %arg0, %arg1, %c0_i32 : i32, i32, i32
  }
}

</mosaic_0001>

<bundles_post_ra>
// kernel: tpu_custom_call.1
= control target key start
LH: loop header
LB: loop body
LE: loop exit
PB: predicated region body
PF: predicated region fallthrough
CT: control target
= control target key end

     0   :  { %7 = vsyncpa [#allocation3], 0  ;;  %s671_s0 = inlined_call_operand.vmem [shape: f32[2,16,8], index: 0, kind: input, shape index: {}]   ;;  %s672_s1 = inlined_call_operand.vmem [shape: f32[2,16,8], index: 1, kind: input, shape index: {}]   ;;  %s673_s2 = inlined_call_operand.hbm [shape: f32[2,8,16], index: 2, kind: output, shape index: {}]  }
   0x1   :  { %9 = vsyncpa [#allocation3 + $0x1], 0  ;;  %s552_s9 = smov 0   ;;  %s554_s10 = smov 0  }
   0x2   :  { %s556_s11 = smov 0   ;;  %s558_s12 = smov 0  }
   0x3   :  { %s560_s13 = smov 0   ;;  %s562_s14 = smov 0  }
   0x4 LB: > { %s381_s15 = sadd.s32 4294967295, %s533_s14   ;;  %s382_s16 = sadd.s32 4294967294, %s533_s14   ;;  %s533_s14 = sphi %s562_s14, %s15_s14   ;;  %s529_s13 = sphi %s560_s13, %s680_s13   ;;  %s525_s12 = sphi %s558_s12, %s679_s12   ;;  %s521_s11 = sphi %s556_s11, %s678_s11   ;;  %s517_s10 = sphi %s554_s10, %s677_s10   ;;  %s513_s9 = sphi %s552_s9, %s676_s9  }
   0x5   : > { %s27_s17 = sadd.s32 1, %s529_s13  ;;  %s92_s18 = sadd.s32 1, %s521_s11 }
   0x6   : > { %p29_p0 = scmp.ge.s32.totalorder %s27_s17, 2  ;;  %p102_p1 = scmp.ne.s32.totalorder %s521_s11, %s517_s10 }
   0x7   : > { %p103_p2 = scmp.eq.s32.totalorder %s381_s15, 1  ;;  %p108_p3 = scmp.ne.s32.totalorder %s517_s10, %s513_s9 }
   0x8   : > { %s682_s17 = smov (%p29_p0, %s27_s17), 0  ;;  %p109_p5 = scmp.eq.s32.totalorder %s382_s16, 1 }
   0x9   : > { %p592_p4 = por %p103_p2, %p102_p1  ;;  %s87_s20 = ssub.s32 %s529_s13, %s682_s17 }
   0xa   : > { %p385_p6 = scmp.ge.s32.totalorder %s533_s14, 1  ;;  %p90_p7 = scmp.eq.s32.totalorder %s87_s20, 0 }
   0xb   : > { %p599_p8 = por %p109_p5, %p108_p3  ;;  %p149_p9 = scmp.lt.s32.totalorder %s533_s14, 3 }
   0xc   : > { %s605_s22 = scalar_select %p90_p7, %s521_s11, %s92_s18  }
   0xd   : > { %p150_p10 = pnand %p385_p6, %p149_p9 }
   0xe   : > { %p182_p11 = scmp.lt.s32.totalorder (!%p150_p10), %s525_s12, 1  ;;  %vm204_vm0 = vcmask (!%p150_p10), 64512   ;;  %v214_v10 = vlaneseq (!%p150_p10)  ;;  %v535_v29 = vmov (!%p150_p10), 0.0   ;;  %s179_s3 = sand.u32 (!%p150_p10), 1, %s517_s10   ;;  %vm272_vm9 = vcmask (!%p150_p10), 130048  }
   0xf   : > { %153 = sbr.rel (%p150_p10) target bundleno = 207 (0xcf), region = 28  ;;  %s386_s4 = sshll.u32 (!%p150_p10), %s179_s3, 3 }
  0x10   : > { %v215_v13 = vshrl.u32 (!%p150_p10), %v214_v10, 7  ;;  %s394_s5 = sshll.u32 (!%p150_p10), %s525_s12, 7  ;;  %s181_s6 = scalar_lea.vmem (!%p150_p10), [#allocation2], %s386_s4 }
  0x11   : > { %s289_s7 = sshll.u32 (!%p150_p10), %s181_s6, 4  ;;  %s624_s16 = scalar_lea.hbm (!%p150_p10), %s673_s2, %s394_s5  ;;  %s626_s7 = int_to_ptr.vmem [resolvable:$true] %s289_s7 }
  0x12   : > { %v216_v16 = vadd.s32 (!%p150_p10), 8, %v215_v13  ;;  %s275_s18 = scalar_lea.sflag (!%p150_p10), [#allocation3], %s179_s3  ;;  %s455_s20 = scalar_lea.vmem (!%p150_p10), %s626_s7, 128 }
  0x13   : > { %p456_p12 = scmp.ne.s32.totalorder (!%p150_p10), %s626_s7, %s455_s20 }
  0x15   : > { %p457_p13 = pnand (!%p150_p10), %p456_p12, %p592_p4 }
  0x16   : > { %s183_s23 = scalar_select %p182_p11, %s525_s12, 1 }
  0x17   : > { %p458_p0 = pneg %p457_p13  ;;  %s536_s12 = smov [#allocation2]  }
  0x18   : > { %s397_s24 = sshll.u32 %s183_s23, 4  ;;  %s459_s23 = sshll.u32 %s536_s12, 4  ;;  %s460_s23 = int_to_ptr.vmem [resolvable:$false] %s459_s23 }
  0x19   : > { %s189_s27 = scalar_lea.vmem %s671_s0, %s397_s24  ;;  %s197_s30 = scalar_lea.vmem %s672_s1, %s397_s24 }
  0x1a   : > { %v198_v0 = vld [vmem:[%s189_s27] sm:$0xff]  ;;  %v199_v1 = vld [vmem:[%s189_s27 + $0x8] sm:$0xff]  ;;  %s461_s24 = scalar_lea.vmem %s460_s23, 256  ;;  %p462_p1 = scmp.lt.s32.totalorder %s626_s7, %s460_s23 }
  0x1b   : > { %v200_v2 = vld [vmem:[%s197_s30] sm:$0xff]  ;;  %v201_v3 = vld [vmem:[%s197_s30 + $0x8] sm:$0xff]  ;;  %p463_p2 = scmp.lt.s32.totalorder %s461_s24, %s455_s20 }
  0x1c   : > { %v202_v4 = vadd.f32 %v200_v2, %v198_v0  ;;  %v203_v5 = vadd.f32 %v201_v3, %v199_v1 }
  0x1d   : > { %p464_p3 = por %p463_p2, %p462_p1 }
  0x1e   : > { %v205_v6 = vsel %vm204_vm0, %v202_v4, -inf  ;;  %v206_v7 = vsel %vm204_vm0, %v203_v5, -inf }
  0x1f   : > { %v207_v8 = vmax.f32 %v205_v6, %v206_v7  ;;  %p465_p5 = pnand %p464_p3, %p458_p0 }
  0x21   : > { %v208_v9 = vrot.slane %v207_v8, 4 }
  0x23   : > { %v209_v11 = vmax.f32 %v207_v8, %v208_v9 }
  0x25   : > { %v210_v12 = vrot.slane %v209_v11, 2 }
  0x27   : > { %v211_v14 = vmax.f32 %v209_v11, %v210_v12 }
  0x29   : > { %v212_v15 = vrot.slane %v211_v14, 1 }
  0x2b   : > { %v213_v17 = vmax.f32 %v211_v14, %v212_v15 }
  0x2d   : > { %vm217_vm1 = vcmp.ge.f32.partialorder %v202_v4, %v213_v17  ;;  %vm218_vm2 = vcmp.ge.f32.partialorder %v203_v5, %v213_v17 }
  0x2e   : > { %v219_v18 = vsel %vm217_vm1, %v215_v13, 16  ;;  %v220_v19 = vsel %vm218_vm2, %v216_v16, 16 }
  0x2f   : > { %v221_v20 = vsel %vm204_vm0, %v219_v18, 2147483647  ;;  %v222_v21 = vsel %vm204_vm0, %v220_v19, 2147483647 }
  0x30   : > { %vm223_vm3 = vcmp.lt.s32.totalorder %v221_v20, %v222_v21 }
  0x31   : > { %v224_v22 = vsel %vm223_vm3, %v221_v20, %v222_v21 }
  0x32   : > { %v225_v23 = vrot.slane %v224_v22, 4 }
  0x34   : > { %vm226_vm4 = vcmp.lt.s32.totalorder %v224_v22, %v225_v23 }
  0x35   : > { %v227_v24 = vsel %vm226_vm4, %v224_v22, %v225_v23 }
  0x36   : > { %v228_v25 = vrot.slane %v227_v24, 2 }
  0x38   : > { %vm229_vm5 = vcmp.lt.s32.totalorder %v227_v24, %v228_v25 }
  0x39   : > { %v230_v26 = vsel %vm229_vm5, %v227_v24, %v228_v25 }
  0x3a   : > { %v231_v27 = vrot.slane %v230_v26, 1 }
  0x3c   : > { %vm232_vm6 = vcmp.lt.s32.totalorder %v230_v26, %v231_v27 }
  0x3d   : > { %v233_v28 = vsel %vm232_vm6, %v230_v26, %v231_v27 }
  0x3e   : > { %vm234_vm7 = vcmp.eq.s32.totalorder %v215_v13, %v233_v28  ;;  %vm235_vm8 = vcmp.eq.s32.totalorder %v216_v16, %v233_v28 }
  0x3f   : > { %v391_v30 = vsel %vm234_vm7, 1.0, %v535_v29  ;;  %v392_v31 = vsel %vm235_vm8, 1.0, %v535_v29 }
  0x40   : > { %240 = vxpose.xlu0.b32.start [1/2] (short) (narrow) %v391_v30, 8 }
  0x44   : > { %241 = vxpose.xlu0.b32.end [2/2] (short) (narrow) %v392_v31, 8 }
  0xc0   : > { %v256_v32 = vpop.trf.xlu0 }
  0xc1   : > { %273 = vst.msk [vmem:[%s181_s6] sm:$0xff] %vm272_vm9, %v256_v32 }
  0xc2   : > { %468 = shalt.err (!%p465_p5)
}
  0xc3   : > { %s469_s25 = scalar_lea.hbm %s624_s16, 128  ;;  %s473_s28 = scalar_lea.hbm %s673_s2, 256 }
  0xc4   : > { %p470_p6 = scmp.ne.s32.totalorder %s624_s16, %s469_s25  ;;  %p474_p10 = scmp.lt.u32.totalorder %s624_s16, %s673_s2 }
  0xc5   : > { %p475_p11 = scmp.lt.u32.totalorder %s473_s28, %s469_s25  ;;  %p477_p13 = scmp.lt.u32.totalorder %s469_s25, %s624_s16 }
  0xc6   : > { %p471_p7 = pnand %p470_p6, %p592_p4 }
  0xc7   : > { %p476_p12 = por %p475_p11, %p474_p10 }
  0xc8   : > { %p472_p9 = pneg %p471_p7 }
  0xc9   : > { %p478_p0 = por %p477_p13, %p476_p12 }
  0xcb   : > { %p479_p1 = pnand %p478_p0, %p472_p9 }
  0xcd   : > { %482 = shalt.err (!%p479_p1)
}
  0xce   : > { %399 = dma.vmem_to_hbm [thread:$0]  (%p592_p4), %s626_s7, 128, %s624_s16, %s275_s18  }
  0xcf PF: > { %p405_p2 = scmp.ge.s32.totalorder %s533_s14, 2  ;;  %s301_s3 = sand.u32 1, %s513_s9  }
  0xd0   : > { %s302_s4 = scalar_lea.sflag [#allocation3], %s301_s3 }
  0xd1   : > { %p402_p3 = pnand %p405_p2, %p599_p8 }
  0xd3   : > { %508 = dma.done.wait (!%p402_p3), %s302_s4, 128  }
  0xd4   : > { %510 = vsyncadd (!%p402_p3), %s302_s4, 4294967168  ;;  %s15_s14 = sadd.s32 1, %s533_s14   ;;  %s676_s9 = smov %s517_s10 }
  0xd5   : > { %p12_p5 = scmp.ge.s32.totalorder %s15_s14, 4   ;;  %s677_s10 = smov %s521_s11 }
  0xd6   : > { %s678_s11 = smov %s605_s22  ;;  %s679_s12 = smov %s529_s13 }
  0xd7   : > { %s680_s13 = smov %s682_s17  ;;  %14 = sbr.rel (!%p12_p5) target bundleno = 4 (0x4), region = 66 }
  0xde   :  { %307 = vsyncpa [#allocation3], 1 }
  0xdf   :  { %309 = vsyncpa [#allocation3 + $0x1], 1 }

</bundles_post_ra>
